<compile_context>
chip_gen: v5e
topology: v5e:2x2
jax: 0.10.0
libtpu: 0.0.40
codegen_flags: <defaults>
</compile_context>

<pallas_src>
import math
import functools

import jax
import jax.numpy as jnp
from jax.experimental import pallas as pl
from jax.experimental.pallas import tpu as pltpu


def _round_up(x, m):
    return ((x + m - 1) // m) * m


def _ff_kernel(x_ref, w1_ref, b1_ref, w2_ref, b2_ref, o_ref, acc_ref):
    # x_ref:  (tm, D)    w1_ref: (D, th)   b1_ref: (1, th)
    # w2_ref: (th, D)    b2_ref: (1, D)    o_ref: (tm, D)   acc_ref: (tm, D) f32
    hk = pl.program_id(1)

    @pl.when(hk == 0)
    def _():
        acc_ref[...] = jnp.zeros_like(acc_ref)

    # First projection chunk: (tm, D) @ (D, th), f32 accumulation on the MXU.
    # Operands stay in their native dtype (no explicit up-casts).
    h = jnp.dot(x_ref[...], w1_ref[...], preferred_element_type=jnp.float32)
    h = h + b1_ref[...].astype(jnp.float32)

    # GELU with tanh approximation (matches F.gelu(x, approximate='tanh')), in f32.
    g = jax.nn.gelu(h, approximate=True)

    # Dropout(p=0.0) is the identity; nothing to do.

    # Second projection chunk: (tm, th) @ (th, D), accumulated across the H grid axis.
    acc_ref[...] += jnp.dot(g.astype(w2_ref.dtype), w2_ref[...],
                            preferred_element_type=jnp.float32)

    # Epilogue: add bias-2 and store the output tile exactly once.
    @pl.when(hk == pl.num_programs(1) - 1)
    def _():
        o_ref[...] = (acc_ref[...] + b2_ref[...].astype(jnp.float32)).astype(o_ref.dtype)


@functools.partial(jax.jit, static_argnames=("tm", "th"))
def feed_forward(x, w1, b1, w2, b2, *, tm=256, th=512):
    """x: (B, S, D).  w1: (D, H), b1: (H,), w2: (H, D), b2: (D,)."""
    B, S, D = x.shape
    H = w1.shape[1]
    M = B * S

    # Clamp tiles to the (padded) problem while keeping TPU tiling constraints:
    # row tiles in multiples of 8 (sublanes), hidden chunks in multiples of 128 (lanes).
    tm_eff = min(tm, _round_up(M, 8))
    th_eff = min(th, _round_up(H, 128))
    M_pad = _round_up(M, tm_eff)
    H_pad = _round_up(H, th_eff)

    x2 = x.reshape(M, D)
    if M_pad != M:
        x2 = jnp.pad(x2, ((0, M_pad - M), (0, 0)))

    w1p = w1
    b1p = b1.reshape(1, H)
    w2p = w2
    if H_pad != H:
        # Zero padding of the hidden dim is exact: padded h columns are 0, gelu(0)=0,
        # and the padded w2 rows are 0, so they contribute nothing to the accumulator.
        w1p = jnp.pad(w1p, ((0, 0), (0, H_pad - H)))
        b1p = jnp.pad(b1p, ((0, 0), (0, H_pad - H)))
        w2p = jnp.pad(w2p, ((0, H_pad - H), (0, 0)))
    b2p = b2.reshape(1, D)

    grid = (M_pad // tm_eff, H_pad // th_eff)

    out = pl.pallas_call(
        _ff_kernel,
        out_shape=jax.ShapeDtypeStruct((M_pad, D), x.dtype),
        grid_spec=pltpu.PrefetchScalarGridSpec(
            num_scalar_prefetch=0,
            grid=grid,
            in_specs=[
                pl.BlockSpec((tm_eff, D), lambda i, h: (i, 0)),    # x row tile
                pl.BlockSpec((D, th_eff), lambda i, h: (0, h)),    # w1 hidden chunk
                pl.BlockSpec((1, th_eff), lambda i, h: (0, h)),    # b1 hidden chunk
                pl.BlockSpec((th_eff, D), lambda i, h: (h, 0)),    # w2 hidden chunk
                pl.BlockSpec((1, D), lambda i, h: (0, 0)),         # b2 (constant)
            ],
            out_specs=pl.BlockSpec((tm_eff, D), lambda i, h: (i, 0)),
            scratch_shapes=[pltpu.VMEM((tm_eff, D), jnp.float32)],
        ),
        compiler_params=pltpu.CompilerParams(
            dimension_semantics=("parallel", "arbitrary"),
            vmem_limit_bytes=48 * 1024 * 1024,
        ),
    )(x2, w1p, b1p, w2p, b2p)

    if M_pad != M:
        out = out[:M]
    return out.reshape(B, S, D)


def _init_linear(key, fan_in, fan_out, dtype=jnp.float32):
    """Deterministic init mirroring nn.Linear default (U(-1/sqrt(fan_in), 1/sqrt(fan_in)))."""
    kw, kb = jax.random.split(key)
    bound = 1.0 / math.sqrt(fan_in)
    w = jax.random.uniform(kw, (fan_in, fan_out), dtype, minval=-bound, maxval=bound)
    b = jax.random.uniform(kb, (fan_out,), dtype, minval=-bound, maxval=bound)
    return w, b


def _reference(x, w1, b1, w2, b2):
    h = x @ w1 + b1
    c = math.sqrt(2.0 / math.pi)
    g = 0.5 * h * (1.0 + jnp.tanh(c * (h + 0.044715 * h ** 3)))
    return g @ w2 + b2


if __name__ == "__main__":
    key = jax.random.PRNGKey(0)
    k_x, k_l1, k_l2 = jax.random.split(key, 3)

    B, S, dim = 2, 8, 32
    hidden = dim * 4  # 128

    x = jax.random.normal(k_x, (B, S, dim), jnp.float32)
    w1, b1 = _init_linear(k_l1, dim, hidden)      # GELU.proj: Linear(dim, hidden)
    w2, b2 = _init_linear(k_l2, hidden, dim)      # net[2]:    Linear(hidden, dim)

    y = feed_forward(x, w1, b1, w2, b2)
    jax.block_until_ready(y)

    y_ref = _reference(x, w1, b1, w2, b2)
    assert jnp.allclose(y, y_ref, atol=1e-4, rtol=1e-4), "mismatch vs reference"

    print("KERNEL_OK")
</pallas_src>

<mosaic_0001>
module attributes {stable_mosaic.version = 11 : i64} {
  func.func @_ff_kernel(%arg0: i32, %arg1: i32, %arg2: memref<16x32xf32, #tpu.memory_space<vmem>>, %arg3: memref<32x128xf32, #tpu.memory_space<vmem>>, %arg4: memref<1x128xf32, #tpu.memory_space<vmem>>, %arg5: memref<128x32xf32, #tpu.memory_space<vmem>>, %arg6: memref<1x32xf32, #tpu.memory_space<vmem>>, %arg7: memref<16x32xf32, #tpu.memory_space<vmem>>, %arg8: memref<16x32xf32, #tpu.memory_space<vmem>>) attributes {dimension_semantics = [#tpu.dimension_semantics<parallel>, #tpu.dimension_semantics<arbitrary>], iteration_bounds = array<i64: 1, 1>, scalar_prefetch = 0 : i64, scratch_operands = 1 : i64, tpu.core_type = #tpu.core_type<tc>, window_params = [{transform_indices = @transform_0, window_bounds = array<i64: 16, 32>}, {transform_indices = @transform_1, window_bounds = array<i64: 32, 128>}, {transform_indices = @transform_2, window_bounds = array<i64: 1, 128>}, {transform_indices = @transform_3, window_bounds = array<i64: 128, 32>}, {pipeline_mode = #tpu.pipeline_mode<synchronous>, transform_indices = @transform_4, window_bounds = array<i64: 1, 32>}, {transform_indices = @transform_5, window_bounds = array<i64: 16, 32>}]} {
    %c0_i32 = arith.constant 0 : i32
    %0 = arith.cmpi eq, %arg1, %c0_i32 : i32
    %1 = arith.extui %0 : i1 to i32
    %c0_i32_0 = arith.constant 0 : i32
    %2 = arith.cmpi ne, %1, %c0_i32_0 : i32
    scf.if %2 {
      %cst_19 = arith.constant 0.000000e+00 : f32
      %30 = vector.broadcast %cst_19 : f32 to vector<16x32xf32>
      %c0_20 = arith.constant 0 : index
      %c0_21 = arith.constant 0 : index
      %31 = vector.load %arg8[%c0_20, %c0_21] : memref<16x32xf32, #tpu.memory_space<vmem>>, vector<16x32xf32>
      tpu.vector_store %arg8[%c0_20, %c0_21], %30 {strides = array<i32>} : memref<16x32xf32, #tpu.memory_space<vmem>>, vector<16x32xf32>,
    } else {
    }
    %c0 = arith.constant 0 : index
    %c0_1 = arith.constant 0 : index
    %3 = vector.load %arg2[%c0, %c0_1] : memref<16x32xf32, #tpu.memory_space<vmem>>, vector<16x32xf32>
    %c0_2 = arith.constant 0 : index
    %c0_3 = arith.constant 0 : index
    %4 = vector.load %arg3[%c0_2, %c0_3] : memref<32x128xf32, #tpu.memory_space<vmem>>, vector<32x128xf32>
    %cst = arith.constant dense<0.000000e+00> : vector<16x128xf32>
    %5 = tpu.matmul %3, %4, %cst {dimension_numbers = #tpu.dot_dimension_numbers<[1], [0], [0], [1], [0, 0, 1, 1], [], []>} : vector<16x32xf32>, vector<32x128xf32>, vector<16x128xf32> -> vector<16x128xf32>
    %c0_4 = arith.constant 0 : index
    %c0_5 = arith.constant 0 : index
    %6 = vector.load %arg4[%c0_4, %c0_5] : memref<1x128xf32, #tpu.memory_space<vmem>>, vector<1x128xf32>
    %7 = vector.broadcast %6 : vector<1x128xf32> to vector<16x128xf32>
    %8 = arith.addf %5, %7 : vector<16x128xf32>
    %9 = arith.mulf %8, %8 : vector<16x128xf32>
    %10 = arith.mulf %8, %9 : vector<16x128xf32>
    %cst_6 = arith.constant 4.471500e-02 : f32
    %11 = vector.broadcast %cst_6 : f32 to vector<16x128xf32>
    %12 = arith.mulf %11, %10 : vector<16x128xf32>
    %13 = arith.addf %8, %12 : vector<16x128xf32>
    %cst_7 = arith.constant 0.797884583 : f32
    %14 = vector.broadcast %cst_7 : f32 to vector<16x128xf32>
    %15 = arith.mulf %14, %13 : vector<16x128xf32>
    %16 = math.tanh %15 : vector<16x128xf32>
    %cst_8 = arith.constant 1.000000e+00 : f32
    %17 = vector.broadcast %cst_8 : f32 to vector<16x128xf32>
    %18 = arith.addf %17, %16 : vector<16x128xf32>
    %cst_9 = arith.constant 5.000000e-01 : f32
    %19 = vector.broadcast %cst_9 : f32 to vector<16x128xf32>
    %20 = arith.mulf %19, %18 : vector<16x128xf32>
    %21 = arith.mulf %8, %20 : vector<16x128xf32>
    %c0_10 = arith.constant 0 : index
    %c0_11 = arith.constant 0 : index
    %22 = vector.load %arg8[%c0_10, %c0_11] : memref<16x32xf32, #tpu.memory_space<vmem>>, vector<16x32xf32>
    %c0_12 = arith.constant 0 : index
    %c0_13 = arith.constant 0 : index
    %23 = vector.load %arg5[%c0_12, %c0_13] : memref<128x32xf32, #tpu.memory_space<vmem>>, vector<128x32xf32>
    %cst_14 = arith.constant dense<0.000000e+00> : vector<16x32xf32>
    %24 = tpu.matmul %21, %23, %cst_14 {dimension_numbers = #tpu.dot_dimension_numbers<[1], [0], [0], [1], [0, 0, 1, 1], [], []>} : vector<16x128xf32>, vector<128x32xf32>, vector<16x32xf32> -> vector<16x32xf32>
    %25 = arith.addf %22, %24 : vector<16x32xf32>
    %c0_15 = arith.constant 0 : index
    %c0_16 = arith.constant 0 : index
    %26 = vector.load %arg8[%c0_15, %c0_16] : memref<16x32xf32, #tpu.memory_space<vmem>>, vector<16x32xf32>
    tpu.vector_store %arg8[%c0_15, %c0_16], %25 {strides = array<i32>} : memref<16x32xf32, #tpu.memory_space<vmem>>, vector<16x32xf32>,
    %c0_i32_17 = arith.constant 0 : i32
    %27 = arith.cmpi eq, %arg1, %c0_i32_17 : i32
    %28 = arith.extui %27 : i1 to i32
    %c0_i32_18 = arith.constant 0 : i32
    %29 = arith.cmpi ne, %28, %c0_i32_18 : i32
    scf.if %29 {
      %c0_19 = arith.constant 0 : index
      %c0_20 = arith.constant 0 : index
      %30 = vector.load %arg8[%c0_19, %c0_20] : memref<16x32xf32, #tpu.memory_space<vmem>>, vector<16x32xf32>
      %c0_21 = arith.constant 0 : index
      %c0_22 = arith.constant 0 : index
      %31 = vector.load %arg6[%c0_21, %c0_22] : memref<1x32xf32, #tpu.memory_space<vmem>>, vector<1x32xf32>
      %32 = vector.broadcast %31 : vector<1x32xf32> to vector<16x32xf32>
      %33 = arith.addf %30, %32 : vector<16x32xf32>
      %c0_23 = arith.constant 0 : index
      %c0_24 = arith.constant 0 : index
      %34 = vector.load %arg7[%c0_23, %c0_24] : memref<16x32xf32, #tpu.memory_space<vmem>>, vector<16x32xf32>
      tpu.vector_store %arg7[%c0_23, %c0_24], %33 {strides = array<i32>} : memref<16x32xf32, #tpu.memory_space<vmem>>, vector<16x32xf32>,
    } else {
    }
    return
  }
  func.func @transform_0(%arg0: i32, %arg1: i32) -> (i32, i32) {
    %c0_i32 = arith.constant 0 : i32
    %c0_i32_0 = arith.constant 0 : i32
    return %arg0, %c0_i32 : i32, i32
  }
  func.func @transform_1(%arg0: i32, %arg1: i32) -> (i32, i32) {
    %c0_i32 = arith.constant 0 : i32
    %c0_i32_0 = arith.constant 0 : i32
    return %c0_i32, %arg1 : i32, i32
  }
  func.func @transform_2(%arg0: i32, %arg1: i32) -> (i32, i32) {
    %c0_i32 = arith.constant 0 : i32
    %c0_i32_0 = arith.constant 0 : i32
    return %c0_i32, %arg1 : i32, i32
  }
  func.func @transform_3(%arg0: i32, %arg1: i32) -> (i32, i32) {
    %c0_i32 = arith.constant 0 : i32
    %c0_i32_0 = arith.constant 0 : i32
    return %arg1, %c0_i32 : i32, i32
  }
  func.func @transform_4(%arg0: i32, %arg1: i32) -> (i32, i32) {
    %c0_i32 = arith.constant 0 : i32
    %c0_i32_0 = arith.constant 0 : i32
    %c0_i32_1 = arith.constant 0 : i32
    return %c0_i32, %c0_i32_0 : i32, i32
  }
  func.func @transform_5(%arg0: i32, %arg1: i32) -> (i32, i32) {
    %c0_i32 = arith.constant 0 : i32
    %c0_i32_0 = arith.constant 0 : i32
    return %arg0, %c0_i32 : i32, i32
  }
}

</mosaic_0001>

<bundles_post_ra>
// kernel: feed_forward.1
= control target key start
LH: loop header
LB: loop body
LE: loop exit
PB: predicated region body
PF: predicated region fallthrough
CT: control target
= control target key end

     0   :  { %s333_s0 = inlined_call_operand.vmem [shape: f32[16,32], index: 0, kind: input, shape index: {}]   ;;  %s334_s1 = inlined_call_operand.vmem [shape: f32[32,128], index: 1, kind: input, shape index: {}]   ;;  %s335_s2 = inlined_call_operand.vmem [shape: f32[1,128], index: 2, kind: input, shape index: {}]   ;;  %s336_s3 = inlined_call_operand.vmem [shape: f32[128,32], index: 3, kind: input, shape index: {}]   ;;  %s337_s4 = inlined_call_operand.vmem [shape: f32[1,32], index: 4, kind: input, shape index: {}]   ;;  %s338_s5 = inlined_call_operand.hbm [shape: f32[16,32], index: 5, kind: output, shape index: {}]  }
   0x1   :  { %v33_v0 = vld [vmem:[%s334_s1 + $0x18] sm:$0xff]  ;;  %v32_v1 = vld [vmem:[%s334_s1 + $0x10] sm:$0xff]  ;;  %v31_v2 = vld [vmem:[%s334_s1 + $0x8] sm:$0xff] }
   0x2   :  { %57 = vmatpush.msra.mxu0 %v33_v0  ;;  %v103_v3 = vld [vmem:[%s336_s3 + $0x78] sm:$0xff]  ;;  %v102_v4 = vld [vmem:[%s336_s3 + $0x70] sm:$0xff] }
   0x3   :  { %104 = vmatpush.msra.mxu1 %v103_v3 }
   0x4   :  { %58 = vmatpush.msra.mxu0 %v32_v1 }
   0x5   :  { %10 = vsyncpa [#allocation4], 0  ;;  %v30_v5 = vld [vmem:[%s334_s1] sm:$0xff]  ;;  %v101_v6 = vld [vmem:[%s336_s3 + $0x68] sm:$0xff]  ;;  %164 = vmatpush.msra.mxu2 %v103_v3  ;;  %vm25_vm0 = vcmask 261120   ;;  %105 = vmatpush.msra.mxu1 %v102_v4  ;;  %v216_v26 = vmov 0.0  }
   0x6   :  { %59 = vmatpush.msra.mxu0 %v31_v2  ;;  %v28_v7 = vld [vmem:[%s333_s0] sm:$0xff]  ;;  %v29_v8 = vld [vmem:[%s333_s0 + $0x8] sm:$0xff]  ;;  %v99_v10 = vld [vmem:[%s336_s3 + $0x58] sm:$0xff]  ;;  %26 = vst.msk [vmem:[#allocation2] sm:$0xff] %vm25_vm0, %v216_v26  ;;  %s217_s11 = smov [#allocation3]   ;;  %s150_s15 = sshll.u32 %s338_s5, 4  ;;  %s151_s15 = int_to_ptr.hbm [resolvable:$true] %s150_s15 }
   0x7   :  { %165 = vmatpush.msra.mxu2 %v102_v4  ;;  %106 = vmatpush.msra.mxu1 %v101_v6  ;;  %v100_v9 = vld [vmem:[%s336_s3 + $0x60] sm:$0xff]  ;;  %v98_v11 = vld [vmem:[%s336_s3 + $0x50] sm:$0xff]  ;;  %v97_v12 = vld [vmem:[%s336_s3 + $0x48] sm:$0xff]  ;;  %27 = vst.msk [vmem:[#allocation2 + $0x8] sm:$0xff] %vm25_vm0, %v216_v26  ;;  %s148_s12 = sshll.u32 %s217_s11, 4  ;;  %s219_s0 = smov 8   ;;  %s149_s12 = int_to_ptr.vmem [resolvable:$true] %s148_s12 }
   0x8   :  { %60 = vmatpush.msra.mxu0 %v30_v5  ;;  %v96_v13 = vld [vmem:[%s336_s3 + $0x40] sm:$0xff]  ;;  %v95_v14 = vld [vmem:[%s336_s3 + $0x38] sm:$0xff]  ;;  %v94_v15 = vld [vmem:[%s336_s3 + $0x30] sm:$0xff] }
   0x9   :  { %162 = vmatmul.msk.f32.vlgmr.msra.gmra.mxu0 %vm25_vm0, %v28_v7  ;;  %166 = vmatpush.msra.mxu2 %v101_v6  ;;  %v93_v16 = vld [vmem:[%s336_s3 + $0x28] sm:$0xff]  ;;  %v92_v17 = vld [vmem:[%s336_s3 + $0x20] sm:$0xff]  ;;  %v91_v18 = vld [vmem:[%s336_s3 + $0x18] sm:$0xff] }
   0xa   :  { %107 = vmatpush.msra.mxu1 %v100_v9  ;;  %v90_v19 = vld [vmem:[%s336_s3 + $0x10] sm:$0xff]  ;;  %v89_v20 = vld [vmem:[%s336_s3 + $0x8] sm:$0xff]  ;;  %v88_v21 = vld [vmem:[%s336_s3] sm:$0xff] }
   0xb   :  { %167 = vmatpush.msra.mxu2 %v100_v9  ;;  %v184_v22 = vld [vmem:[%s335_s2] ss:$0 sm:$0xff] }
   0xc   :  { %108 = vmatpush.msra.mxu1 %v99_v10  ;;  %v185_v49 = vld [vmem:[%s337_s4] ss:$0 sm:$0xff]  ;;  %s218_s4 = smov 128  }
   0xd   :  { %168 = vmatpush.msra.mxu2 %v99_v10  ;;  %v86_v46 = vld [vmem:[#allocation2] sm:$0xff] }
   0xe   :  { %109 = vmatpush.msra.mxu1 %v98_v11  ;;  %v87_v52 = vld [vmem:[#allocation2 + $0x8] sm:$0xff] }
   0xf   :  { %169 = vmatpush.msra.mxu2 %v98_v11 }
  0x10   :  { %110 = vmatpush.msra.mxu1 %v97_v12 }
  0x11   :  { %163 = vmatmul.msk.f32.gmra.mxu0 %vm25_vm0, %v29_v8  ;;  %170 = vmatpush.msra.mxu2 %v97_v12 }
  0x12   :  { %111 = vmatpush.msra.mxu1 %v96_v13 }
  0x13   :  { %171 = vmatpush.msra.mxu2 %v96_v13 }
  0x14   :  { %112 = vmatpush.msra.mxu1 %v95_v14 }
  0x15   :  { %172 = vmatpush.msra.mxu2 %v95_v14 }
  0x16   :  { %113 = vmatpush.msra.mxu1 %v94_v15 }
  0x17   :  { %173 = vmatpush.msra.mxu2 %v94_v15 }
  0x18   :  { %114 = vmatpush.msra.mxu1 %v93_v16 }
  0x19   :  { %174 = vmatpush.msra.mxu2 %v93_v16 }
  0x1a   :  { %115 = vmatpush.msra.mxu1 %v92_v17 }
  0x1b   :  { %175 = vmatpush.msra.mxu2 %v92_v17 }
  0x1c   :  { %116 = vmatpush.msra.mxu1 %v91_v18 }
  0x1d   :  { %176 = vmatpush.msra.mxu2 %v91_v18 }
  0x1e   :  { %117 = vmatpush.msra.mxu1 %v90_v19 }
  0x1f   :  { %177 = vmatpush.msra.mxu2 %v90_v19 }
  0x20   :  { %118 = vmatpush.msra.mxu1 %v89_v20 }
  0x21   :  { %178 = vmatpush.msra.mxu2 %v89_v20 }
  0x22   :  { %119 = vmatpush.msra.mxu1 %v88_v21 }
  0x23   :  { %179 = vmatpush.msra.mxu2 %v88_v21 }
  0x86   :  { %v62_v23 = vpop.f32.mrf.mxu0 }
  0x87   :  { %v63_v24 = vadd.f32 %v184_v22, %v62_v23 }
  0x89   :  { %v68_v25 = vmul.f32 %v63_v24, %v63_v24 }
  0x8b   :  { %v70_v27 = vmul.f32 %v68_v25, %v63_v24 }
  0x8d   :  { %v72_v28 = vmul.f32 0.044715, %v70_v27 }
  0x8e   :  { %v65_v29 = vpop.f32.mrf.mxu0 }
  0x8f   :  { %v66_v30 = vadd.f32 %v184_v22, %v65_v29  ;;  %v74_v31 = vadd.f32 %v72_v28, %v63_v24 }
  0x91   :  { %v69_v32 = vmul.f32 %v66_v30, %v66_v30  ;;  %v76_v33 = vmul.f32 0.7978846, %v74_v31 }
  0x93   :  { %v71_v34 = vmul.f32 %v69_v32, %v66_v30  ;;  %186 = vtanh.f32 %v76_v33 }
  0x95   :  { %v73_v35 = vmul.f32 0.044715, %v71_v34 }
  0x97   :  { %v75_v36 = vadd.f32 %v73_v35, %v66_v30 }
  0x99   :  { %v187_v37 = vpop.eup %186  ;;  %v77_v38 = vmul.f32 0.7978846, %v75_v36 }
  0x9a   :  { %v80_v39 = vadd.f32 1.0, %v187_v37 }
  0x9b   :  { %188 = vtanh.f32 %v77_v38 }
  0x9c   :  { %v82_v40 = vmul.f32 0.5, %v80_v39 }
  0x9e   :  { %v84_v41 = vmul.f32 %v82_v40, %v63_v24 }
  0xa0   :  { %120 = vmatmul.f32.vlgmr.msra.gmra.mxu1 %v84_v41 }
  0xa1   :  { %v189_v42 = vpop.eup %188 }
  0xa2   :  { %v81_v43 = vadd.f32 1.0, %v189_v42 }
  0xa4   :  { %v83_v44 = vmul.f32 0.5, %v81_v43 }
  0xa6   :  { %v85_v45 = vmul.f32 %v83_v44, %v66_v30 }
  0xa8   :  { %123 = vmatmul.f32.vlgmr.msra.gmra.mxu2 %v85_v45 }
 0x11d   :  { %v121_v47 = vpop.f32.mrf.mxu1 }
 0x11e   :  { %v127_v48 = vadd.f32 %v121_v47, %v86_v46 }
 0x120   :  { %129 = vst.msk [vmem:[#allocation2] sm:$0xff] %vm25_vm0, %v127_v48 }
 0x127   :  { %v134_v50 = vld [vmem:[#allocation2] sm:$0xff] }
 0x128   :  { %v140_v51 = vadd.f32 %v185_v49, %v134_v50 }
 0x12a   :  { %142 = vst.msk [vmem:[#allocation3] sm:$0xff] %vm25_vm0, %v140_v51 }
 0x12b   :  { %v124_v53 = vpop.f32.mrf.mxu2 }
 0x12c   :  { %v128_v54 = vadd.f32 %v124_v53, %v87_v52 }
 0x12e   :  { %130 = vst.msk [vmem:[#allocation2 + $0x8] sm:$0xff] %vm25_vm0, %v128_v54 }
 0x135   :  { %v135_v55 = vld [vmem:[#allocation2 + $0x8] sm:$0xff] }
 0x136   :  { %v141_v56 = vadd.f32 %v185_v49, %v135_v55 }
 0x138   :  { %143 = vst.msk [vmem:[#allocation3 + $0x8] sm:$0xff] %vm25_vm0, %v141_v56 }
 0x139   :  { %156 = dma.vmem_to_hbm [thread:$0]  %s149_s12, 256, %s151_s15, [#allocation4], %s218_s4, %s218_s4, %s219_s0  }
 0x13a   :  { %214 = dma.done.wait [#allocation4], 256  }
 0x13b   :  { %215 = vsyncadd [#allocation4], 4294967040 }
 0x13c   :  { %161 = vsyncpa [#allocation4], 1 }

</bundles_post_ra>
